<compile_context>
chip_gen: v5e
topology: v5e:2x2
jax: 0.10.0
libtpu: 0.0.40
codegen_flags: <defaults>
</compile_context>

<pallas_src>
import jax
import jax.numpy as jnp
from jax.experimental import pallas as pl
from jax.experimental.pallas import tpu as pltpu

EPS = 1e-5          # nn.BatchNorm2d default eps
LANE = 128          # lane width / channel + K padding quantum
TM_DEFAULT = 256    # rows per grid step (fits double-buffered VMEM on v5e/v6e/v7x)


# ----------------------------- Pallas kernels ------------------------------ #

def matmul_stats_kernel(p_ref, w_ref, y_ref, stats_ref):
    """One M-tile of y = patches @ weights, plus per-channel sum / sum-of-squares."""
    y = jnp.dot(p_ref[...], w_ref[...], preferred_element_type=jnp.float32)
    y_ref[...] = y
    s1 = jnp.sum(y, axis=0, keepdims=True)        # (1, Cp)
    s2 = jnp.sum(y * y, axis=0, keepdims=True)    # (1, Cp)
    stats_ref[...] = jnp.concatenate([s1, s2], axis=0)[None, :, :]


def bn_relu_kernel(y_ref, scale_ref, shift_ref, o_ref):
    """out = relu(scale * y + shift)  (BN folded to per-channel scale/shift)."""
    o_ref[...] = jnp.maximum(
        scale_ref[...] * y_ref[...] + shift_ref[...], 0.0).astype(o_ref.dtype)


def tail_kernel(y_ref, sc_ref, scale_ref, shift_ref, sscale_ref, sshift_ref, o_ref):
    """out = relu(bn2(y) + shortcut); both BNs pre-folded to scale/shift."""
    main = scale_ref[...] * y_ref[...] + shift_ref[...]
    short = sscale_ref[...] * sc_ref[...] + sshift_ref[...]
    o_ref[...] = jnp.maximum(main + short, 0.0)


# ------------------------------ pallas wrappers ----------------------------- #

def _round_up(a, b):
    return (a + b - 1) // b * b


def _conv_matmul_stats(patches, wmat, tm):
    """Tiled (Mp, Kp)bf16 @ (Kp, Cp)bf16 -> y f32 and per-tile channel stats."""
    mp, kp = patches.shape
    cp = wmat.shape[1]
    g = mp // tm
    cost = pl.CostEstimate(
        flops=2 * mp * kp * cp, transcendentals=0,
        bytes_accessed=patches.size * 2 + wmat.size * 2 + mp * cp * 4 + g * 2 * cp * 4)
    return pl.pallas_call(
        matmul_stats_kernel,
        out_shape=(jax.ShapeDtypeStruct((mp, cp), jnp.float32),
                   jax.ShapeDtypeStruct((g, 2, cp), jnp.float32)),
        grid=(g,),
        in_specs=[pl.BlockSpec((tm, kp), lambda i: (i, 0)),
                  pl.BlockSpec((kp, cp), lambda i: (0, 0))],     # weight stays resident
        out_specs=(pl.BlockSpec((tm, cp), lambda i: (i, 0)),
                   pl.BlockSpec((1, 2, cp), lambda i: (i, 0, 0))),
        compiler_params=pltpu.CompilerParams(dimension_semantics=("parallel",)),
        cost_estimate=cost,
    )(patches, wmat)


def _bn_fold(stats, gamma_p, beta_p, m_true):
    """Reduce per-tile partials to global batch stats; fold into scale/shift."""
    total = jnp.sum(stats, axis=0)                                # (2, Cp)
    mean = total[0] / m_true
    var = jnp.maximum(total[1] / m_true - mean * mean, 0.0)
    scale = gamma_p * jax.lax.rsqrt(var + EPS)
    shift = beta_p - scale * mean
    return scale.reshape(1, -1), shift.reshape(1, -1)


def _apply_bn_relu(y, scale, shift, tm):
    mp, cp = y.shape
    g = mp // tm
    return pl.pallas_call(
        bn_relu_kernel,
        out_shape=jax.ShapeDtypeStruct((mp, cp), jnp.bfloat16),
        grid=(g,),
        in_specs=[pl.BlockSpec((tm, cp), lambda i: (i, 0)),
                  pl.BlockSpec((1, cp), lambda i: (0, 0)),
                  pl.BlockSpec((1, cp), lambda i: (0, 0))],
        out_specs=pl.BlockSpec((tm, cp), lambda i: (i, 0)),
        compiler_params=pltpu.CompilerParams(dimension_semantics=("parallel",)),
        cost_estimate=pl.CostEstimate(
            flops=2 * mp * cp, transcendentals=0,
            bytes_accessed=mp * cp * 4 + mp * cp * 2),
    )(y, scale, shift)


def _apply_tail(y, sc, scale, shift, sscale, sshift, tm):
    mp, cp = y.shape
    g = mp // tm
    return pl.pallas_call(
        tail_kernel,
        out_shape=jax.ShapeDtypeStruct((mp, cp), jnp.float32),
        grid=(g,),
        in_specs=[pl.BlockSpec((tm, cp), lambda i: (i, 0)),
                  pl.BlockSpec((tm, cp), lambda i: (i, 0)),
                  pl.BlockSpec((1, cp), lambda i: (0, 0)),
                  pl.BlockSpec((1, cp), lambda i: (0, 0)),
                  pl.BlockSpec((1, cp), lambda i: (0, 0)),
                  pl.BlockSpec((1, cp), lambda i: (0, 0))],
        out_specs=pl.BlockSpec((tm, cp), lambda i: (i, 0)),
        compiler_params=pltpu.CompilerParams(dimension_semantics=("parallel",)),
        cost_estimate=pl.CostEstimate(
            flops=4 * mp * cp, transcendentals=0,
            bytes_accessed=3 * mp * cp * 4),
    )(y, sc, scale, shift, sscale, sshift)


# ------------------------------ glue (plain JAX) ---------------------------- #

def _im2col(x_nhwc, kh, kw, stride, pad):
    """Extract conv patches -> (N*Ho*Wo, kh*kw*C) rows (channel on lane dim)."""
    N, H, W, C = x_nhwc.shape
    Ho = (H + 2 * pad - kh) // stride + 1
    Wo = (W + 2 * pad - kw) // stride + 1
    xp = jnp.pad(x_nhwc, ((0, 0), (pad, pad), (pad, pad), (0, 0)))
    taps = []
    for di in range(kh):
        for dj in range(kw):
            taps.append(xp[:, di:di + stride * (Ho - 1) + 1:stride,
                            dj:dj + stride * (Wo - 1) + 1:stride, :])
    patches = jnp.concatenate(taps, axis=-1)              # (N, Ho, Wo, kh*kw*C)
    return patches.reshape(N * Ho * Wo, kh * kw * C), (N, Ho, Wo)


def _oihw_to_mat(w):
    """(Cout, Cin, kh, kw) -> (kh*kw*Cin, Cout), matching im2col tap order."""
    co, ci, kh, kw = w.shape
    return jnp.transpose(w, (2, 3, 1, 0)).reshape(kh * kw * ci, co)


def _pad2d(a, rows, cols, dtype):
    r, c = a.shape
    return jnp.pad(a, ((0, rows - r), (0, cols - c))).astype(dtype)


def _pad1d(v, n):
    return jnp.pad(v, (0, n - v.shape[0])).astype(jnp.float32)


def init_params(key, in_planes, planes, stride):
    ks = jax.random.split(key, 10)
    p = {
        "w1": 0.1 * jax.random.normal(ks[0], (planes, in_planes, 3, 3), jnp.float32),
        "g1": 1.0 + 0.1 * jax.random.normal(ks[1], (planes,), jnp.float32),
        "b1": 0.1 * jax.random.normal(ks[2], (planes,), jnp.float32),
        "w2": 0.1 * jax.random.normal(ks[3], (planes, planes, 3, 3), jnp.float32),
        "g2": 1.0 + 0.1 * jax.random.normal(ks[4], (planes,), jnp.float32),
        "b2": 0.1 * jax.random.normal(ks[5], (planes,), jnp.float32),
    }
    if stride != 1 or in_planes != planes:
        p["ws"] = 0.1 * jax.random.normal(ks[6], (planes, in_planes, 1, 1), jnp.float32)
        p["gs"] = 1.0 + 0.1 * jax.random.normal(ks[7], (planes,), jnp.float32)
        p["bs"] = 0.1 * jax.random.normal(ks[8], (planes,), jnp.float32)
    return p


def basic_block_forward(x_nchw, params, stride):
    """Pallas implementation of BasicBlock.forward (training-mode BN). x is NCHW."""
    in_planes = x_nchw.shape[1]
    planes = params["w1"].shape[0]
    has_proj = (stride != 1) or (in_planes != planes)

    x = jnp.transpose(x_nchw, (0, 2, 3, 1)).astype(jnp.float32)    # NHWC
    cp = _round_up(planes, LANE)

    # ---- conv1 (3x3, stride, pad=1): tiled matmul + channel stats ----
    p1, (N, Ho, Wo) = _im2col(x.astype(jnp.bfloat16), 3, 3, stride, 1)
    M = N * Ho * Wo
    tm = min(TM_DEFAULT, _round_up(M, 8))
    mp = _round_up(M, tm)
    k1p = _round_up(p1.shape[1], LANE)
    p1p = _pad2d(p1, mp, k1p, jnp.bfloat16)
    w1p = _pad2d(_oihw_to_mat(params["w1"]), k1p, cp, jnp.bfloat16)
    y1, st1 = _conv_matmul_stats(p1p, w1p, tm)
    sc1, sh1 = _bn_fold(st1, _pad1d(params["g1"], cp), _pad1d(params["b1"], cp), M)

    # ---- bn1 + relu (folded scale/shift), bf16 writeback ----
    out1 = _apply_bn_relu(y1, sc1, sh1, tm)

    # ---- conv2 (3x3, stride 1, pad=1): tiled matmul + channel stats ----
    out1_nhwc = out1[:M, :planes].reshape(N, Ho, Wo, planes)
    p2, _ = _im2col(out1_nhwc, 3, 3, 1, 1)
    k2p = _round_up(p2.shape[1], LANE)
    p2p = _pad2d(p2, mp, k2p, jnp.bfloat16)
    w2p = _pad2d(_oihw_to_mat(params["w2"]), k2p, cp, jnp.bfloat16)
    y2, st2 = _conv_matmul_stats(p2p, w2p, tm)
    sc2, sh2 = _bn_fold(st2, _pad1d(params["g2"], cp), _pad1d(params["b2"], cp), M)

    # ---- shortcut ----
    if has_proj:
        xs = x[:, ::stride, ::stride, :].reshape(M, in_planes)
        ksp = _round_up(in_planes, LANE)
        xsp = _pad2d(xs, mp, ksp, jnp.bfloat16)
        wsp = _pad2d(_oihw_to_mat(params["ws"]), ksp, cp, jnp.bfloat16)
        sc_y, st_s = _conv_matmul_stats(xsp, wsp, tm)
        scs, shs = _bn_fold(st_s, _pad1d(params["gs"], cp), _pad1d(params["bs"], cp), M)
    else:
        sc_y = _pad2d(x.reshape(M, planes), mp, cp, jnp.float32)
        scs = jnp.ones((1, cp), jnp.float32)
        shs = jnp.zeros((1, cp), jnp.float32)

    # ---- bn2 + shortcut + relu (single fused FMA/max epilogue) ----
    out = _apply_tail(y2, sc_y, sc2, sh2, scs, shs, tm)

    out = out[:M, :planes].reshape(N, Ho, Wo, planes)
    return jnp.transpose(out, (0, 3, 1, 2))                        # NCHW


# ----------------------------- pure-JAX reference --------------------------- #

def ref_forward(x, params, stride):
    def conv(y, w, s, pad):
        return jax.lax.conv_general_dilated(
            y, w, (s, s), ((pad, pad), (pad, pad)),
            dimension_numbers=("NCHW", "OIHW", "NCHW"))

    def bn(y, g, b):
        mean = jnp.mean(y, axis=(0, 2, 3), keepdims=True)
        var = jnp.mean((y - mean) ** 2, axis=(0, 2, 3), keepdims=True)
        return (g.reshape(1, -1, 1, 1) * (y - mean) * jax.lax.rsqrt(var + EPS)
                + b.reshape(1, -1, 1, 1))

    out = jax.nn.relu(bn(conv(x, params["w1"], stride, 1), params["g1"], params["b1"]))
    out = bn(conv(out, params["w2"], 1, 1), params["g2"], params["b2"])
    if "ws" in params:
        sc = bn(conv(x, params["ws"], stride, 0), params["gs"], params["bs"])
    else:
        sc = x
    return jax.nn.relu(out + sc)


# ----------------------------------- main ----------------------------------- #

if __name__ == "__main__":
    key = jax.random.PRNGKey(0)
    kx, kp1, kp2 = jax.random.split(key, 3)

    # bf16 MXU inputs vs f32 reference -> tolerance ~3e-2.
    TOL = dict(rtol=3e-2, atol=3e-2)

    # Case 1: projection shortcut (stride=2, in_planes != planes)
    N, Cin, H, W, planes, stride = 2, 4, 16, 16, 8, 2
    x = jax.random.normal(kx, (N, Cin, H, W), jnp.float32)
    params = init_params(kp1, Cin, planes, stride)
    out = jax.block_until_ready(basic_block_forward(x, params, stride))
    ref = jax.block_until_ready(ref_forward(x, params, stride))
    assert out.shape == (N, planes, H // stride, W // stride)
    assert jnp.allclose(out, ref, **TOL), (
        "projection-path mismatch, max err %.4g" % float(jnp.max(jnp.abs(out - ref))))

    # Case 2: identity shortcut (stride=1, in_planes == planes)
    params_id = init_params(kp2, planes, planes, 1)
    x2 = jax.random.normal(kx, (N, planes, H, W), jnp.float32)
    out2 = jax.block_until_ready(basic_block_forward(x2, params_id, 1))
    ref2 = jax.block_until_ready(ref_forward(x2, params_id, 1))
    assert out2.shape == (N, planes, H, W)
    assert jnp.allclose(out2, ref2, **TOL), (
        "identity-path mismatch, max err %.4g" % float(jnp.max(jnp.abs(out2 - ref2))))

    print("KERNEL_OK")
</pallas_src>

<mosaic_0001>
module attributes {stable_mosaic.version = 11 : i64} {
  func.func @matmul_stats_kernel(%arg0: i32, %arg1: memref<128x128xbf16, #tpu.memory_space<vmem>>, %arg2: memref<128x128xbf16, #tpu.memory_space<vmem>>, %arg3: memref<128x128xf32, #tpu.memory_space<vmem>>, %arg4: memref<1x2x128xf32, #tpu.memory_space<vmem>>) attributes {dimension_semantics = [#tpu.dimension_semantics<parallel>], iteration_bounds = array<i64: 1>, scalar_prefetch = 0 : i64, scratch_operands = 0 : i64, tpu.core_type = #tpu.core_type<tc>, window_params = [{transform_indices = @transform_0, window_bounds = array<i64: 128, 128>}, {pipeline_mode = #tpu.pipeline_mode<synchronous>, transform_indices = @transform_1, window_bounds = array<i64: 128, 128>}, {transform_indices = @transform_2, window_bounds = array<i64: 128, 128>}, {transform_indices = @transform_3, window_bounds = array<i64: 1, 2, 128>}]} {
    %c0 = arith.constant 0 : index
    %c0_0 = arith.constant 0 : index
    %0 = vector.load %arg1[%c0, %c0_0] : memref<128x128xbf16, #tpu.memory_space<vmem>>, vector<128x128xbf16>
    %c0_1 = arith.constant 0 : index
    %c0_2 = arith.constant 0 : index
    %1 = vector.load %arg2[%c0_1, %c0_2] : memref<128x128xbf16, #tpu.memory_space<vmem>>, vector<128x128xbf16>
    %cst = arith.constant dense<0.000000e+00> : vector<128x128xf32>
    %2 = tpu.matmul %0, %1, %cst {dimension_numbers = #tpu.dot_dimension_numbers<[1], [0], [0], [1], [0, 0, 1, 1], [], []>} : vector<128x128xbf16>, vector<128x128xbf16>, vector<128x128xf32> -> vector<128x128xf32>
    %c0_3 = arith.constant 0 : index
    %c0_4 = arith.constant 0 : index
    %3 = vector.load %arg3[%c0_3, %c0_4] : memref<128x128xf32, #tpu.memory_space<vmem>>, vector<128x128xf32>
    tpu.vector_store %arg3[%c0_3, %c0_4], %2 {strides = array<i32>} : memref<128x128xf32, #tpu.memory_space<vmem>>, vector<128x128xf32>,
    %cst_5 = arith.constant dense<0.000000e+00> : vector<128xf32>
    %4 = vector.multi_reduction <add>, %2, %cst_5 [0] : vector<128x128xf32> to vector<128xf32>
    %5 = vector.shape_cast %4 : vector<128xf32> to vector<1x128xf32>
    %6 = arith.mulf %2, %2 : vector<128x128xf32>
    %cst_6 = arith.constant dense<0.000000e+00> : vector<128xf32>
    %7 = vector.multi_reduction <add>, %6, %cst_6 [0] : vector<128x128xf32> to vector<128xf32>
    %8 = vector.shape_cast %7 : vector<128xf32> to vector<1x128xf32>
    %9 = tpu.concatenate %5, %8 in 0 : vector<1x128xf32>, vector<1x128xf32> -> vector<2x128xf32>
    %10 = vector.shape_cast %9 : vector<2x128xf32> to vector<1x2x128xf32>
    %c0_7 = arith.constant 0 : index
    %c0_8 = arith.constant 0 : index
    %c0_9 = arith.constant 0 : index
    %11 = vector.load %arg4[%c0_7, %c0_8, %c0_9] : memref<1x2x128xf32, #tpu.memory_space<vmem>>, vector<1x2x128xf32>
    tpu.vector_store %arg4[%c0_7, %c0_8, %c0_9], %10 {strides = array<i32>} : memref<1x2x128xf32, #tpu.memory_space<vmem>>, vector<1x2x128xf32>,
    return
  }
  func.func @transform_0(%arg0: i32) -> (i32, i32) {
    %c0_i32 = arith.constant 0 : i32
    %c0_i32_0 = arith.constant 0 : i32
    return %arg0, %c0_i32 : i32, i32
  }
  func.func @transform_1(%arg0: i32) -> (i32, i32) {
    %c0_i32 = arith.constant 0 : i32
    %c0_i32_0 = arith.constant 0 : i32
    %c0_i32_1 = arith.constant 0 : i32
    return %c0_i32, %c0_i32_0 : i32, i32
  }
  func.func @transform_2(%arg0: i32) -> (i32, i32) {
    %c0_i32 = arith.constant 0 : i32
    %c0_i32_0 = arith.constant 0 : i32
    return %arg0, %c0_i32 : i32, i32
  }
  func.func @transform_3(%arg0: i32) -> (i32, i32, i32) {
    %c0_i32 = arith.constant 0 : i32
    %c0_i32_0 = arith.constant 0 : i32
    %c0_i32_1 = arith.constant 0 : i32
    return %arg0, %c0_i32, %c0_i32_0 : i32, i32, i32
  }
}

</mosaic_0001>

<bundles_post_ra>
// kernel: tpu_custom_call.1
= control target key start
LH: loop header
LB: loop body
LE: loop exit
PB: predicated region body
PF: predicated region fallthrough
CT: control target
= control target key end

     0   :  { %9 = vsyncpa [#allocation3], 0  ;;  %s605_s0 = inlined_call_operand.hbm [shape: bf16[128,128], index: 0, kind: input, shape index: {}]   ;;  %s606_s1 = inlined_call_operand.hbm [shape: bf16[128,128], index: 1, kind: input, shape index: {}]   ;;  %s607_s2 = inlined_call_operand.hbm [shape: f32[128,128], index: 2, kind: output, shape index: {0}]   ;;  %s608_s3 = inlined_call_operand.hbm [shape: f32[1,2,128], index: 3, kind: output, shape index: {1}]  }
   0x1   :  { %10 = vsyncpa [#allocation6], 0 }
   0x2   :  { %11 = vsyncpa [#allocation4], 0 }
   0x3   :  { %12 = vsyncpa [#allocation9], 0  ;;  %s17_s14 = sshll.u32 %s605_s0, 4  ;;  %s553_s15 = smov [#allocation2]   ;;  %s18_s14 = int_to_ptr.hbm [resolvable:$true] %s17_s14 }
   0x4   :  { %s19_s16 = sshll.u32 %s553_s15, 4  ;;  %s30_s19 = sshll.u32 %s606_s1, 4  ;;  %s20_s16 = int_to_ptr.vmem [resolvable:$true] %s19_s16  ;;  %s31_s19 = int_to_ptr.hbm [resolvable:$true] %s30_s19 }
   0x5   :  { %s554_s20 = smov 64   ;;  %s555_s21 = smov 4  }
   0x6   :  { %25 = dma.hbm_to_vmem [thread:$0]  %s18_s14, 1024, %s20_s16, [#allocation3], %s554_s20, %s554_s20, %s555_s21  }
   0x7   :  { %s556_s22 = smov [#allocation5]  }
   0x8   :  { %s32_s23 = sshll.u32 %s556_s22, 4  ;;  %s33_s23 = int_to_ptr.vmem [resolvable:$true] %s32_s23 }
   0x9   :  { %38 = dma.hbm_to_vmem [thread:$0]  %s31_s19, 1024, %s33_s23, [#allocation6], %s554_s20, %s554_s20, %s555_s21  }
   0xa   :  { %545 = dma.done.wait [#allocation3], 1024  }
   0xb   :  { %546 = vsyncadd [#allocation3], 4294966272 }
   0xc   :  { %547 = dma.done.wait [#allocation6], 1024  }
   0xd   :  { %548 = vsyncadd [#allocation6], 4294966272  ;;  %v416_v0 = vld [vmem:[#allocation5 + $0x38] sm:$0xff]  ;;  %v415_v1 = vld [vmem:[#allocation5 + $0x30] sm:$0xff]  ;;  %s557_s0 = smov [#allocation7]   ;;  %s307_s26 = sshll.u32 %s607_s2, 4  ;;  %s308_s26 = int_to_ptr.hbm [resolvable:$true] %s307_s26 }
   0xe   :  { %175 = vmatpush.bf16.msra.mxu0 %v416_v0  ;;  %417 = vmatpush.bf16.msra.mxu1 %v416_v0  ;;  %v414_v2 = vld [vmem:[#allocation5 + $0x28] sm:$0xff]  ;;  %v413_v3 = vld [vmem:[#allocation5 + $0x20] sm:$0xff]  ;;  %v412_v4 = vld [vmem:[#allocation5 + $0x18] sm:$0xff]  ;;  %s305_s1 = sshll.u32 %s557_s0, 4  ;;  %s558_s27 = smov 128   ;;  %vm298_vm0 = vcmask 1040384   ;;  %s306_s1 = int_to_ptr.vmem [resolvable:$true] %s305_s1 }
   0xf   :  { %418 = vmatpush.bf16.msra.mxu2 %v416_v0  ;;  %419 = vmatpush.bf16.msra.mxu3 %v416_v0  ;;  %v411_v5 = vld [vmem:[#allocation5 + $0x10] sm:$0xff]  ;;  %v410_v6 = vld [vmem:[#allocation5 + $0x8] sm:$0xff]  ;;  %v409_v7 = vld [vmem:[#allocation5] sm:$0xff]  ;;  %s559_s28 = smov 8   ;;  %s560_s2 = smov [#allocation8]  }
  0x10   :  { %v401_v8 = vld [vmem:[#allocation2] sm:$0xff]  ;;  %v403_v9 = vld [vmem:[#allocation2 + $0x10] sm:$0xff]  ;;  %v402_v12 = vld [vmem:[#allocation2 + $0x8] sm:$0xff]  ;;  %s319_s29 = sshll.u32 %s560_s2, 4  ;;  %s321_s5 = sshll.u32 %s608_s3, 4  ;;  %s320_s29 = int_to_ptr.vmem [resolvable:$true] %s319_s29  ;;  %s322_s5 = int_to_ptr.hbm [resolvable:$true] %s321_s5 }
  0x11   :  { %v405_v10 = vld [vmem:[#allocation2 + $0x20] sm:$0xff]  ;;  %v407_v11 = vld [vmem:[#allocation2 + $0x30] sm:$0xff]  ;;  %v404_v13 = vld [vmem:[#allocation2 + $0x18] sm:$0xff] }
  0x12   :  { %176 = vmatpush.bf16.msra.mxu0 %v415_v1  ;;  %420 = vmatpush.bf16.msra.mxu1 %v415_v1  ;;  %v406_v14 = vld [vmem:[#allocation2 + $0x28] sm:$0xff]  ;;  %v408_v15 = vld [vmem:[#allocation2 + $0x38] sm:$0xff] }
  0x13   :  { %421 = vmatpush.bf16.msra.mxu2 %v415_v1  ;;  %422 = vmatpush.bf16.msra.mxu3 %v415_v1 }
  0x16   :  { %177 = vmatpush.bf16.msra.mxu0 %v414_v2  ;;  %423 = vmatpush.bf16.msra.mxu1 %v414_v2 }
  0x17   :  { %424 = vmatpush.bf16.msra.mxu2 %v414_v2  ;;  %425 = vmatpush.bf16.msra.mxu3 %v414_v2 }
  0x1a   :  { %178 = vmatpush.bf16.msra.mxu0 %v413_v3  ;;  %426 = vmatpush.bf16.msra.mxu1 %v413_v3 }
  0x1b   :  { %427 = vmatpush.bf16.msra.mxu2 %v413_v3  ;;  %428 = vmatpush.bf16.msra.mxu3 %v413_v3 }
  0x1e   :  { %179 = vmatpush.bf16.msra.mxu0 %v412_v4  ;;  %429 = vmatpush.bf16.msra.mxu1 %v412_v4 }
  0x1f   :  { %430 = vmatpush.bf16.msra.mxu2 %v412_v4  ;;  %431 = vmatpush.bf16.msra.mxu3 %v412_v4 }
  0x22   :  { %180 = vmatpush.bf16.msra.mxu0 %v411_v5  ;;  %432 = vmatpush.bf16.msra.mxu1 %v411_v5 }
  0x23   :  { %433 = vmatpush.bf16.msra.mxu2 %v411_v5  ;;  %434 = vmatpush.bf16.msra.mxu3 %v411_v5 }
  0x26   :  { %181 = vmatpush.bf16.msra.mxu0 %v410_v6  ;;  %435 = vmatpush.bf16.msra.mxu1 %v410_v6 }
  0x27   :  { %436 = vmatpush.bf16.msra.mxu2 %v410_v6  ;;  %437 = vmatpush.bf16.msra.mxu3 %v410_v6 }
  0x2a   :  { %182 = vmatpush.bf16.msra.mxu0 %v409_v7  ;;  %438 = vmatpush.bf16.msra.mxu1 %v409_v7 }
  0x2b   :  { %439 = vmatpush.bf16.msra.mxu2 %v409_v7  ;;  %440 = vmatpush.bf16.msra.mxu3 %v409_v7 }
  0x2d   :  { %183 = vmatmul.bf16.vlgmr.msra.gmra.mxu0 %v401_v8  ;;  %193 = vmatmul.bf16.vlgmr.msra.gmra.mxu1 %v403_v9 }
  0x2e   :  { %203 = vmatmul.bf16.vlgmr.msra.gmra.mxu2 %v405_v10  ;;  %213 = vmatmul.bf16.vlgmr.msra.gmra.mxu3 %v407_v11 }
  0x3d   :  { %188 = vmatmul.bf16.gmra.mxu0 %v402_v12  ;;  %198 = vmatmul.bf16.gmra.mxu1 %v404_v13 }
  0x3e   :  { %208 = vmatmul.bf16.gmra.mxu2 %v406_v14  ;;  %218 = vmatmul.bf16.gmra.mxu3 %v408_v15 }
  0xaa   :  { %v184_v16 = vpop.f32.mrf.mxu0  ;;  %v194_v17 = vpop.f32.mrf.mxu1 }
  0xab   :  { %224 = vst [vmem:[#allocation7] sm:$0xff] %v184_v16  ;;  %v261_v27 = vmul.f32 %v184_v16, %v184_v16  ;;  %v265_v39 = vmul.f32 %v194_v17, %v194_v17 }
  0xac   :  { %228 = vst [vmem:[#allocation7 + $0x20] sm:$0xff] %v194_v17 }
  0xb1   :  { %v204_v18 = vpop.f32.mrf.mxu2  ;;  %v587_v19 = vpop.f32.mrf.mxu3 }
  0xb2   :  { %v186_v20 = vpop.f32.mrf.mxu0  ;;  %v196_v21 = vpop.f32.mrf.mxu1  ;;  %232 = vst [vmem:[#allocation7 + $0x40] sm:$0xff] %v204_v18  ;;  %v269_v53 = vmul.f32 %v204_v18, %v204_v18  ;;  %v273_v1 = vmul.f32 %v587_v19, %v587_v19 }
  0xb3   :  { %225 = vst [vmem:[#allocation7 + $0x8] sm:$0xff] %v186_v20  ;;  %v262_v26 = vmul.f32 %v186_v20, %v186_v20  ;;  %v240_v28 = vadd.f32 %v186_v20, %v184_v16  ;;  %v266_v42 = vmul.f32 %v196_v21, %v196_v21 }
  0xb4   :  { %229 = vst [vmem:[#allocation7 + $0x28] sm:$0xff] %v196_v21 }
  0xb5   :  { %236 = vst [vmem:[#allocation7 + $0x60] sm:$0xff] %v587_v19  ;;  %v277_v30 = vadd.f32 %v262_v26, %v261_v27 }
  0xb9   :  { %v206_v22 = vpop.f32.mrf.mxu2  ;;  %v590_v23 = vpop.f32.mrf.mxu3 }
  0xba   :  { %v189_v24 = vpop.f32.mrf.mxu0  ;;  %v199_v25 = vpop.f32.mrf.mxu1  ;;  %233 = vst [vmem:[#allocation7 + $0x48] sm:$0xff] %v206_v22  ;;  %v270_v56 = vmul.f32 %v206_v22, %v206_v22  ;;  %v274_v4 = vmul.f32 %v590_v23, %v590_v23 }
  0xbb   :  { %226 = vst [vmem:[#allocation7 + $0x10] sm:$0xff] %v189_v24  ;;  %v263_v29 = vmul.f32 %v189_v24, %v189_v24  ;;  %v241_v31 = vadd.f32 %v240_v28, %v189_v24  ;;  %v267_v45 = vmul.f32 %v199_v25, %v199_v25 }
  0xbc   :  { %230 = vst [vmem:[#allocation7 + $0x30] sm:$0xff] %v199_v25 }
  0xbd   :  { %237 = vst [vmem:[#allocation7 + $0x68] sm:$0xff] %v590_v23  ;;  %v278_v36 = vadd.f32 %v277_v30, %v263_v29 }
  0xc1   :  { %v209_v32 = vpop.f32.mrf.mxu2  ;;  %v219_v33 = vpop.f32.mrf.mxu3 }
  0xc2   :  { %v191_v34 = vpop.f32.mrf.mxu0  ;;  %v201_v35 = vpop.f32.mrf.mxu1  ;;  %234 = vst [vmem:[#allocation7 + $0x50] sm:$0xff] %v209_v32  ;;  %v271_v60 = vmul.f32 %v209_v32, %v209_v32  ;;  %v275_v8 = vmul.f32 %v219_v33, %v219_v33 }
  0xc3   :  { %227 = vst [vmem:[#allocation7 + $0x18] sm:$0xff] %v191_v34  ;;  %v242_v37 = vadd.f32 %v241_v31, %v191_v34  ;;  %v264_v38 = vmul.f32 %v191_v34, %v191_v34  ;;  %v268_v51 = vmul.f32 %v201_v35, %v201_v35 }
  0xc4   :  { %231 = vst [vmem:[#allocation7 + $0x38] sm:$0xff] %v201_v35 }
  0xc5   :  { %v243_v40 = vadd.f32 %v242_v37, %v194_v17  ;;  %v279_v41 = vadd.f32 %v278_v36, %v264_v38  ;;  %238 = vst [vmem:[#allocation7 + $0x70] sm:$0xff] %v219_v33 }
  0xc7   :  { %v280_v43 = vadd.f32 %v279_v41, %v265_v39  ;;  %v244_v44 = vadd.f32 %v243_v40, %v196_v21 }
  0xc9   :  { %v245_v46 = vadd.f32 %v244_v44, %v199_v25  ;;  %v281_v47 = vadd.f32 %v280_v43, %v266_v42  ;;  %v211_v48 = vpop.f32.mrf.mxu2  ;;  %v221_v49 = vpop.f32.mrf.mxu3 }
  0xca   :  { %235 = vst [vmem:[#allocation7 + $0x58] sm:$0xff] %v211_v48  ;;  %v272_v0 = vmul.f32 %v211_v48, %v211_v48  ;;  %v276_v12 = vmul.f32 %v221_v49, %v221_v49 }
  0xcb   :  { %v246_v50 = vadd.f32 %v245_v46, %v201_v35  ;;  %v282_v52 = vadd.f32 %v281_v47, %v267_v45  ;;  %239 = vst [vmem:[#allocation7 + $0x78] sm:$0xff] %v221_v49 }
  0xcc   :  { %313 = dma.vmem_to_hbm [thread:$0]  %s306_s1, 2048, %s308_s26, [#allocation4], %s558_s27, %s558_s27, %s559_s28  }
  0xcd   :  { %v247_v54 = vadd.f32 %v246_v50, %v204_v18  ;;  %v283_v55 = vadd.f32 %v282_v52, %v268_v51 }
  0xcf   :  { %v284_v57 = vadd.f32 %v283_v55, %v269_v53  ;;  %v248_v58 = vadd.f32 %v247_v54, %v206_v22 }
  0xd1   :  { %v249_v59 = vadd.f32 %v248_v58, %v209_v32  ;;  %v285_v61 = vadd.f32 %v284_v57, %v270_v56 }
  0xd3   :  { %v286_v62 = vadd.f32 %v285_v61, %v271_v60  ;;  %v250_v63 = vadd.f32 %v249_v59, %v211_v48 }
  0xd5   :  { %v251_v2 = vadd.f32 %v250_v63, %v587_v19  ;;  %v287_v3 = vadd.f32 %v286_v62, %v272_v0 }
  0xd7   :  { %v288_v5 = vadd.f32 %v287_v3, %v273_v1  ;;  %v252_v6 = vadd.f32 %v251_v2, %v590_v23 }
  0xd9   :  { %v253_v7 = vadd.f32 %v252_v6, %v219_v33  ;;  %v289_v9 = vadd.f32 %v288_v5, %v274_v4 }
  0xdb   :  { %v290_v10 = vadd.f32 %v289_v9, %v275_v8  ;;  %v254_v11 = vadd.f32 %v253_v7, %v221_v49 }
  0xdd   :  { %v255_v13 = vrot.slane %v254_v11, 4  ;;  %v291_v14 = vadd.f32 %v290_v10, %v276_v12 }
  0xdf   :  { %v256_v15 = vadd.f32 %v255_v13, %v254_v11  ;;  %v292_v16 = vrot.slane %v291_v14, 4 }
  0xe1   :  { %v257_v17 = vrot.slane %v256_v15, 2  ;;  %v293_v18 = vadd.f32 %v292_v16, %v291_v14 }
  0xe3   :  { %v258_v19 = vadd.f32 %v257_v17, %v256_v15  ;;  %v294_v20 = vrot.slane %v293_v18, 2 }
  0xe5   :  { %v259_v21 = vrot.slane %v258_v19, 1  ;;  %v295_v22 = vadd.f32 %v294_v20, %v293_v18 }
  0xe7   :  { %v296_v24 = vrot.slane %v295_v22, 1  ;;  %v260_v23 = vadd.f32 %v259_v21, %v258_v19 }
  0xe9   :  { %v297_v25 = vadd.f32 %v296_v24, %v295_v22 }
  0xeb   :  { %v299_v26 = vsel %vm298_vm0, %v260_v23, %v297_v25 }
  0xec   :  { %300 = vst [vmem:[#allocation8] sm:$0x3] %v299_v26 }
  0xed   :  { %324 = dma.vmem_to_hbm [thread:$0]  %s320_s29, 32, %s322_s5, [#allocation9]  }
  0xee   :  { %549 = dma.done.wait [#allocation4], 2048  }
  0xef   :  { %550 = vsyncadd [#allocation4], 4294965248 }
  0xf0   :  { %551 = dma.done.wait [#allocation9], 32  }
  0xf1   :  { %552 = vsyncadd [#allocation9], 4294967264 }
  0xf2   :  { %333 = vsyncpa [#allocation3], 1 }
  0xf3   :  { %334 = vsyncpa [#allocation6], 1 }
  0xf4   :  { %335 = vsyncpa [#allocation4], 1 }
  0xf5   :  { %336 = vsyncpa [#allocation9], 1 }

</bundles_post_ra>
